<compile_context>
chip_gen: v6e
topology: v6e:2x2x1
jax: 0.10.0
libtpu: 0.0.40
codegen_flags: <defaults>
</compile_context>

<pallas_src>
import numpy as np
import jax
import jax.numpy as jnp
from jax import lax
from jax.experimental import pallas as pl
from jax.experimental.pallas import tpu as pltpu


# ---------------------------------------------------------------------------
# Kernel 1: tiled dense projection  (B*S, H) @ (H, E*2*D) + bias
# ---------------------------------------------------------------------------
def dense_kernel(x_ref, w_ref, b_ref, o_ref):
    o_ref[...] = (
        jnp.dot(x_ref[...], w_ref[...], preferred_element_type=jnp.float32)
        + b_ref[...]
    )


def dense_proj(x2d, w, b, tm=512):
    """Row-tiled dense projection. Weights resident, rows pipelined."""
    M, H = x2d.shape
    OUT = w.shape[1]
    tm = min(tm, M)
    Mp = -(-M // tm) * tm
    if Mp != M:
        x2d = jnp.pad(x2d, ((0, Mp - M), (0, 0)))
    b2d = b.reshape(1, OUT)

    # VMEM budget per step ~ 2*(tm*H + tm*OUT)*4 + H*OUT*4 bytes; tm=512 keeps
    # this far below v7x's 64 MiB cap at typical BERT sizes.
    # TODO(synk): add a K grid axis + f32 accumulator scratch for very large H.
    out = pl.pallas_call(
        dense_kernel,
        out_shape=jax.ShapeDtypeStruct((Mp, OUT), jnp.float32),
        grid=(Mp // tm,),
        in_specs=[
            pl.BlockSpec((tm, H), lambda i: (i, 0)),
            pl.BlockSpec((H, OUT), lambda i: (0, 0)),
            pl.BlockSpec((1, OUT), lambda i: (0, 0)),
        ],
        out_specs=pl.BlockSpec((tm, OUT), lambda i: (i, 0)),
        compiler_params=pltpu.CompilerParams(
            dimension_semantics=("parallel",),
            vmem_limit_bytes=48 * 1024 * 1024,
        ),
    )(x2d, w, b2d)
    return out[:M] if Mp != M else out


# ---------------------------------------------------------------------------
# Kernel 2: per-batch RoPE + q.k^T (all ent types) + masks, grid=(B,)
# ---------------------------------------------------------------------------
def make_gp_kernel(E, D):
    def kernel(x_ref, cos_ref, sa_ref, sb_ref, pad_ref, bias_ref, o_ref):
        x = x_ref[0]                       # (S, L) with L = E*2*D
        L = x.shape[1]

        # RoPE over the whole slab:
        #   out = x*cos + roll(x,-1)*sinA + roll(x,+1)*sinB
        # sinA is nonzero only at even lanes (value -sin), sinB only at odd
        # lanes (value +sin), so the pair-swap never crosses a D-chunk
        # boundary and the circular wrap-around terms are multiplied by 0.
        # Rolls use the XLU slot, multiplies the VPU -- the MXU stays free
        # for the q.k^T matmuls below.
        x_rope = (x * cos_ref[...]
                  + pltpu.roll(x, L - 1, axis=1) * sa_ref[...]   # == roll(x, -1)
                  + pltpu.roll(x, 1, axis=1) * sb_ref[...])

        pad = pad_ref[0]                   # (1, S)  key-position mask
        bias = bias_ref[0]                 # (S, S)  precomputed additive bias

        for e in range(E):                 # static unroll over entity types
            q = x_rope[:, e * 2 * D: e * 2 * D + D]        # already * 1/sqrt(D)
            k = x_rope[:, e * 2 * D + D: (e + 1) * 2 * D]
            logits = lax.dot_general(
                q, k,
                dimension_numbers=(((1,), (1,)), ((), ())),
                preferred_element_type=jnp.float32)         # (S, S)
            o_ref[0, e] = logits * pad + bias

    return kernel


def globalpointer_logits(proj, cos_t, sinA_t, sinB_t, pad3, bias, E, D):
    """proj: (B, S, E*2*D) -> logits (B, E, S, S)."""
    B, S, L = proj.shape
    # TODO(synk): for large S on v7x, add a query-tile grid axis so the output
    # block is (1, E, tq, S) instead of the full (1, E, S, S).
    return pl.pallas_call(
        make_gp_kernel(E, D),
        out_shape=jax.ShapeDtypeStruct((B, E, S, S), jnp.float32),
        grid=(B,),
        in_specs=[
            pl.BlockSpec((1, S, L), lambda b: (b, 0, 0)),
            pl.BlockSpec((S, L), lambda b: (0, 0)),
            pl.BlockSpec((S, L), lambda b: (0, 0)),
            pl.BlockSpec((S, L), lambda b: (0, 0)),
            pl.BlockSpec((1, 1, S), lambda b: (b, 0, 0)),
            pl.BlockSpec((1, S, S), lambda b: (b, 0, 0)),
        ],
        out_specs=pl.BlockSpec((1, E, S, S), lambda b: (b, 0, 0, 0)),
        compiler_params=pltpu.CompilerParams(
            dimension_semantics=("parallel",),
            vmem_limit_bytes=48 * 1024 * 1024,
        ),
    )(proj, cos_t, sinA_t, sinB_t, pad3, bias)


# ---------------------------------------------------------------------------
# Wrapper-side table construction (tiny, host/XLA glue)
# ---------------------------------------------------------------------------
def sinusoidal_cos_sin(seq_len, output_dim):
    """Repeat-interleaved cos / sin tables of shape (S, output_dim)."""
    pos = jnp.arange(seq_len, dtype=jnp.float32)[:, None]
    idx = jnp.arange(output_dim // 2, dtype=jnp.float32)
    inv_freq = jnp.power(10000.0, -2.0 * idx / output_dim)
    ang = pos * inv_freq                                # (S, D/2)
    cos_pos = jnp.repeat(jnp.cos(ang), 2, axis=-1)      # (S, D) c0,c0,c1,c1,...
    sin_pos = jnp.repeat(jnp.sin(ang), 2, axis=-1)      # (S, D) s0,s0,s1,s1,...
    return cos_pos, sin_pos


def rope_tables(S, D, E, scale_q, rope=True):
    """cos / signed-sin tables tiled to (S, E*2*D); 1/sqrt(D) folded into q."""
    if rope:
        cos, sin = sinusoidal_cos_sin(S, D)
    else:
        cos = jnp.ones((S, D), jnp.float32)
        sin = jnp.zeros((S, D), jnp.float32)
    even = (jnp.arange(D) % 2 == 0).astype(jnp.float32)[None, :]
    sinA = -sin * even          # multiplies roll(x, -1)  -> x[.., 2j+1] at lane 2j
    sinB = sin * (1.0 - even)   # multiplies roll(x, +1)  -> x[.., 2j]   at lane 2j+1

    def tile(t):
        chunk = jnp.concatenate([t * scale_q, t], axis=-1)   # [q-half | k-half]
        return jnp.tile(chunk, (1, E))                        # (S, E*2*D)

    return tile(cos), tile(sinA), tile(sinB)


# ---------------------------------------------------------------------------
# GlobalPointer forward (glue + kernels)
# ---------------------------------------------------------------------------
def global_pointer_forward(params, input_ids, attention_mask, token_type_ids,
                           ent_type_size, inner_dim, rope=True):
    # "encoder": deterministic embedding lookup standing in for BERT.
    # TODO(synk): arbitrary external encoder (BERT) not reproducible in-kernel.
    last_hidden_state = params["emb"][input_ids]          # (B, S, H) float32
    B, S, H = last_hidden_state.shape
    E, D = ent_type_size, inner_dim
    L = E * 2 * D

    # dense projection (Pallas kernel 1)
    proj = dense_proj(last_hidden_state.reshape(B * S, H), params["w"], params["b"])
    proj = proj.reshape(B, S, L)      # contiguous reshape -- no transpose round trip

    scale = jnp.float32(1.0 / (D ** 0.5))
    cos_t, sinA_t, sinB_t = rope_tables(S, D, E, scale, rope)

    # precomputed additive mask bias (tril + key padding), already /sqrt(D)
    pad = attention_mask.astype(jnp.float32)              # (B, S)
    row = jnp.arange(S)[:, None]
    col = jnp.arange(S)[None, :]
    tril = (row > col).astype(jnp.float32)                # (S, S)
    bias = (-(1.0 - pad)[:, None, :] - tril[None, :, :]) * (jnp.float32(1e12) * scale)
    pad3 = pad.reshape(B, 1, S)

    # RoPE + einsum + masks (Pallas kernel 2)
    return globalpointer_logits(proj, cos_t, sinA_t, sinB_t, pad3, bias, E, D)


# ---------------------------------------------------------------------------
# Pure-JAX reference (mirrors the PyTorch code) for a correctness check
# ---------------------------------------------------------------------------
def reference_forward(params, input_ids, attention_mask, ent_type_size, inner_dim):
    x = params["emb"][input_ids]                          # (B, S, H)
    B, S, H = x.shape
    E, D = ent_type_size, inner_dim
    out = x.reshape(B * S, H) @ params["w"] + params["b"]
    out = out.reshape(B, S, E, 2 * D)
    qw, kw = out[..., :D], out[..., D:]

    cos_pos, sin_pos = sinusoidal_cos_sin(S, D)
    cos_b = cos_pos[None, :, None, :]
    sin_b = sin_pos[None, :, None, :]

    def rot(t):
        t2 = jnp.stack([-t[..., 1::2], t[..., ::2]], axis=-1).reshape(t.shape)
        return t * cos_b + t2 * sin_b

    qr, kr = rot(qw), rot(kw)
    logits = jnp.einsum("bmhd,bnhd->bhmn", qr, kr)
    pad = attention_mask.astype(jnp.float32)[:, None, None, :]
    logits = logits * pad - (1.0 - pad) * 1e12
    row = jnp.arange(S)[:, None]
    col = jnp.arange(S)[None, :]
    tril = (row > col).astype(jnp.float32)[None, None]
    logits = logits - tril * 1e12
    return logits / (D ** 0.5)


# ---------------------------------------------------------------------------
if __name__ == "__main__":
    B, S, H = 2, 8, 32          # batch, seq_len, hidden_size
    E, D = 4, 16                # ent_type_size, inner_dim
    VOCAB = 100

    key = jax.random.PRNGKey(0)
    k_emb, k_w, k_b, k_ids = jax.random.split(key, 4)

    params = {
        "emb": jax.random.normal(k_emb, (VOCAB, H), jnp.float32) * 0.5,
        "w": jax.random.normal(k_w, (H, E * 2 * D), jnp.float32) * 0.1,
        "b": jax.random.normal(k_b, (E * 2 * D,), jnp.float32) * 0.01,
    }

    input_ids = jax.random.randint(k_ids, (B, S), 0, VOCAB, dtype=jnp.int32)
    attention_mask = jnp.array(
        [[1, 1, 1, 1, 1, 1, 1, 1],
         [1, 1, 1, 1, 1, 0, 0, 0]], dtype=jnp.float32)
    token_type_ids = jnp.zeros((B, S), jnp.int32)  # unused by the synthetic encoder

    logits = global_pointer_forward(
        params, input_ids, attention_mask, token_type_ids, E, D, rope=True)
    logits = jax.block_until_ready(logits)

    ref = reference_forward(params, input_ids, attention_mask, E, D)
    assert logits.shape == (B, E, S, S)
    np.testing.assert_allclose(np.asarray(logits), np.asarray(ref),
                               rtol=2e-5, atol=1e-3)

    print("KERNEL_OK")
</pallas_src>

<mosaic_0001>
module attributes {stable_mosaic.version = 11 : i64} {
  func.func @dense_kernel(%arg0: i32, %arg1: memref<16x32xf32, #tpu.memory_space<vmem>>, %arg2: memref<32x128xf32, #tpu.memory_space<vmem>>, %arg3: memref<1x128xf32, #tpu.memory_space<vmem>>, %arg4: memref<16x128xf32, #tpu.memory_space<vmem>>) attributes {dimension_semantics = [#tpu.dimension_semantics<parallel>], iteration_bounds = array<i64: 1>, scalar_prefetch = 0 : i64, scratch_operands = 0 : i64, tpu.core_type = #tpu.core_type<tc>, window_params = [{transform_indices = @transform_0, window_bounds = array<i64: 16, 32>}, {pipeline_mode = #tpu.pipeline_mode<synchronous>, transform_indices = @transform_1, window_bounds = array<i64: 32, 128>}, {pipeline_mode = #tpu.pipeline_mode<synchronous>, transform_indices = @transform_2, window_bounds = array<i64: 1, 128>}, {transform_indices = @transform_3, window_bounds = array<i64: 16, 128>}]} {
    %c0 = arith.constant 0 : index
    %c0_0 = arith.constant 0 : index
    %0 = vector.load %arg1[%c0, %c0_0] : memref<16x32xf32, #tpu.memory_space<vmem>>, vector<16x32xf32>
    %c0_1 = arith.constant 0 : index
    %c0_2 = arith.constant 0 : index
    %1 = vector.load %arg2[%c0_1, %c0_2] : memref<32x128xf32, #tpu.memory_space<vmem>>, vector<32x128xf32>
    %cst = arith.constant dense<0.000000e+00> : vector<16x128xf32>
    %2 = tpu.matmul %0, %1, %cst {dimension_numbers = #tpu.dot_dimension_numbers<[1], [0], [0], [1], [0, 0, 1, 1], [], []>} : vector<16x32xf32>, vector<32x128xf32>, vector<16x128xf32> -> vector<16x128xf32>
    %c0_3 = arith.constant 0 : index
    %c0_4 = arith.constant 0 : index
    %3 = vector.load %arg3[%c0_3, %c0_4] : memref<1x128xf32, #tpu.memory_space<vmem>>, vector<1x128xf32>
    %4 = vector.broadcast %3 : vector<1x128xf32> to vector<16x128xf32>
    %5 = arith.addf %2, %4 : vector<16x128xf32>
    %c0_5 = arith.constant 0 : index
    %c0_6 = arith.constant 0 : index
    %6 = vector.load %arg4[%c0_5, %c0_6] : memref<16x128xf32, #tpu.memory_space<vmem>>, vector<16x128xf32>
    tpu.vector_store %arg4[%c0_5, %c0_6], %5 {strides = array<i32>} : memref<16x128xf32, #tpu.memory_space<vmem>>, vector<16x128xf32>,
    return
  }
  func.func @transform_0(%arg0: i32) -> (i32, i32) {
    %c0_i32 = arith.constant 0 : i32
    %c0_i32_0 = arith.constant 0 : i32
    return %arg0, %c0_i32 : i32, i32
  }
  func.func @transform_1(%arg0: i32) -> (i32, i32) {
    %c0_i32 = arith.constant 0 : i32
    %c0_i32_0 = arith.constant 0 : i32
    %c0_i32_1 = arith.constant 0 : i32
    return %c0_i32, %c0_i32_0 : i32, i32
  }
  func.func @transform_2(%arg0: i32) -> (i32, i32) {
    %c0_i32 = arith.constant 0 : i32
    %c0_i32_0 = arith.constant 0 : i32
    %c0_i32_1 = arith.constant 0 : i32
    return %c0_i32, %c0_i32_0 : i32, i32
  }
  func.func @transform_3(%arg0: i32) -> (i32, i32) {
    %c0_i32 = arith.constant 0 : i32
    %c0_i32_0 = arith.constant 0 : i32
    return %arg0, %c0_i32 : i32, i32
  }
}

</mosaic_0001>

<bundles_post_ra>
// kernel: tpu_custom_call.1
= control target key start
LH: loop header
LB: loop body
LE: loop exit
PB: predicated region body
PF: predicated region fallthrough
CT: control target
= control target key end

     0   :  { %8 = vsyncpa [#allocation3], 0  ;;  %s297_s0 = inlined_call_operand.hbm [shape: f32[16,32], index: 0, kind: input, shape index: {}]   ;;  %s298_s1 = inlined_call_operand.hbm [shape: f32[32,128], index: 1, kind: input, shape index: {}]   ;;  %s299_s2 = inlined_call_operand.vmem [shape: f32[1,128], index: 2, kind: input, shape index: {}]   ;;  %s300_s3 = inlined_call_operand.hbm [shape: f32[16,128], index: 3, kind: output, shape index: {}]  }
   0x1   :  { %9 = vsyncpa [#allocation6], 0 }
   0x2   :  { %10 = vsyncpa [#allocation4], 0  ;;  %s249_s12 = smov [#allocation2]  }
   0x3   :  { %s16_s13 = sshll.u32 %s249_s12, 4  ;;  %s17_s13 = int_to_ptr.vmem [resolvable:$true] %s16_s13 }
   0x4   :  { %s191_s14 = scalar_lea.vmem %s17_s13, 256  ;;  %p196_p1 = scmp.lt.s32.totalorder %s17_s13, %s17_s13 }
   0x5   :  { %p192_p0 = scmp.ne.s32.totalorder %s17_s13, %s191_s14  ;;  %p197_p2 = scmp.lt.s32.totalorder %s191_s14, %s191_s14 }
   0x7   :  { %p198_p3 = por %p197_p2, %p196_p1 }
   0x9   :  { %p199_p4 = pnand %p198_p3, %p192_p0 }
   0xb   :  { %202 = shalt.err (!%p199_p4)
}
   0xc   :  { %s250_s15 = smov 128   ;;  %s251_s16 = smov 8  }
   0xd   :  { %22 = dma.hbm_to_vmem [thread:$0]  %s297_s0, 256, %s17_s13, [#allocation3], %s250_s15, %s250_s15, %s251_s16  }
   0xe   :  { %s252_s19 = smov [#allocation5]  }
   0xf   :  { %s28_s20 = sshll.u32 %s252_s19, 4  ;;  %s29_s20 = int_to_ptr.vmem [resolvable:$true] %s28_s20 }
  0x10   :  { %s211_s21 = scalar_lea.vmem %s29_s20, 512  ;;  %p216_p6 = scmp.lt.s32.totalorder %s29_s20, %s29_s20 }
  0x11   :  { %p212_p5 = scmp.ne.s32.totalorder %s29_s20, %s211_s21  ;;  %p217_p7 = scmp.lt.s32.totalorder %s211_s21, %s211_s21 }
  0x13   :  { %p218_p8 = por %p217_p7, %p216_p6 }
  0x15   :  { %p219_p9 = pnand %p218_p8, %p212_p5 }
  0x17   :  { %222 = shalt.err (!%p219_p9)
}
  0x18   :  { %34 = dma.hbm_to_vmem [thread:$0]  %s298_s1, 512, %s29_s20, [#allocation6], %s250_s15, %s250_s15, %s251_s16  }
  0x19   :  { %243 = dma.done.wait [#allocation3], 256  }
  0x1a   :  { %244 = vsyncadd [#allocation3], 4294967040 }
  0x1b   :  { %245 = dma.done.wait [#allocation6], 512  }
  0x1c   :  { %246 = vsyncadd [#allocation6], 4294966784  ;;  %vm56_vm0 = vcmask 261120   ;;  %v48_v0 = vld [vmem:[#allocation5 + $0x18] sm:$0xff]  ;;  %v47_v1 = vld [vmem:[#allocation5 + $0x10] sm:$0xff]  ;;  %s253_s24 = smov [#allocation7]  }
  0x1d   :  { %167 = vmatprep.subr.mxu0 %v48_v0  ;;  %v43_v2 = vld [vmem:[#allocation2] sm:$0xff]  ;;  %v46_v3 = vld [vmem:[#allocation5 + $0x8] sm:$0xff]  ;;  %v45_v4 = vld [vmem:[#allocation5] sm:$0xff]  ;;  %s145_s25 = sshll.u32 %s253_s24, 4  ;;  %s146_s25 = int_to_ptr.vmem [resolvable:$true] %s145_s25 }
  0x1e   :  { %168 = vmatpush3.msra.mxu0 %v48_v0  ;;  %175 = vmatprep.mubr.msk.f32.mxu0 %vm56_vm0, %v43_v2  ;;  %v44_v5 = vld [vmem:[#allocation2 + $0x8] sm:$0xff]  ;;  %v158_v6 = vld [vmem:[%s299_s2] ss:$0 sm:$0xff]  ;;  %s223_s26 = scalar_lea.vmem %s146_s25, 256  ;;  %p228_p11 = scmp.lt.s32.totalorder %s146_s25, %s146_s25 }
  0x1f   :  { %169 = vmatprep.subr.mxu0 %v47_v1  ;;  %p224_p10 = scmp.ne.s32.totalorder %s146_s25, %s223_s26  ;;  %p229_p12 = scmp.lt.s32.totalorder %s223_s26, %s223_s26 }
  0x20   :  { %170 = vmatpush3.msra.mxu0 %v47_v1 }
  0x21   :  { %171 = vmatprep.subr.mxu0 %v46_v3  ;;  %p230_p13 = por %p229_p12, %p228_p11 }
  0x22   :  { %172 = vmatpush3.msra.mxu0 %v46_v3 }
  0x23   :  { %173 = vmatprep.subr.mxu0 %v45_v4  ;;  %p231_p0 = pnand %p230_p13, %p224_p10 }
  0x24   :  { %174 = vmatpush3.msra.mxu0 %v45_v4 }
  0x25   :  { %176 = vmatmul.mubr.msk.f32.vlgmr.msra.gmra.mxu0 %vm56_vm0, %v44_v5 }
  0xe5   :  { %v177_v7 = vpop.f32.mrf.mxu0 }
  0xe6   :  { %v135_v8 = vadd.f32 %v177_v7, %v158_v6 }
  0xe7   :  { %v129_v9 = vpop.f32.mrf.mxu0 }
  0xe8   :  { %139 = vst [vmem:[#allocation7 + $0x8] sm:$0xff] %v135_v8  ;;  %v130_v10 = vadd.f32 %v158_v6, %v129_v9 }
  0xea   :  { %138 = vst [vmem:[#allocation7] sm:$0xff] %v130_v10 }
  0xeb   :  { %234 = shalt.err (!%p231_p0)
}
  0xec   :  { %151 = dma.vmem_to_hbm [thread:$0]  %s146_s25, 256, %s300_s3, [#allocation4], %s250_s15, %s250_s15, %s251_s16  }
  0xed   :  { %247 = dma.done.wait [#allocation4], 256  }
  0xee   :  { %248 = vsyncadd [#allocation4], 4294967040 }
  0xef   :  { %155 = vsyncpa [#allocation3], 1 }
  0xf0   :  { %156 = vsyncpa [#allocation6], 1 }
  0xf1   :  { %157 = vsyncpa [#allocation4], 1 }

</bundles_post_ra>
